<compile_context>
chip_gen: v7x
topology: tpu7x:2x2x1
jax: 0.10.0
libtpu: 0.0.40
codegen_flags: <defaults>
</compile_context>

<pallas_src>
import functools

import jax
import jax.numpy as jnp
import numpy as np
from jax.experimental import pallas as pl
from jax.experimental.pallas import tpu as pltpu

_LANES = 128  # TPU vreg lane width


def _bce_logits_mean_kernel(x_ref, t_ref, o_ref, acc_ref, *, n_valid, inv_n):
    # x_ref, t_ref: (TR, 128) f32 tiles of logits / targets
    # o_ref:        (1, 1)    f32 final mean loss
    # acc_ref:      (1, 128)  f32 per-lane running sums (persists across grid steps)
    i = pl.program_id(0)

    @pl.when(i == 0)
    def _():
        acc_ref[...] = jnp.zeros_like(acc_ref)

    x = x_ref[...]
    t = t_ref[...]
    tr, lanes = x.shape

    # Mask out the zero-padding appended by the wrapper (only matters on the
    # last tile; VPU work is fully hidden under the HBM DMA).
    rows = jax.lax.broadcasted_iota(jnp.int32, (tr, lanes), 0)
    cols = jax.lax.broadcasted_iota(jnp.int32, (tr, lanes), 1)
    gidx = (i * tr + rows) * lanes + cols
    mask = gidx < n_valid

    # Numerically stable BCE-with-logits (matches PyTorch's formulation).
    loss = jnp.maximum(x, 0.0) - x * t + jnp.log1p(jnp.exp(-jnp.abs(x)))
    loss = jnp.where(mask, loss, 0.0)

    # Sublane-reduce this tile to per-lane partial sums and accumulate.
    acc_ref[...] += jnp.sum(loss, axis=0, keepdims=True)

    @pl.when(i == pl.num_programs(0) - 1)
    def _():
        # Lane-reduce the running sums and apply the mean divisor.
        o_ref[...] = jnp.sum(acc_ref[...], axis=1, keepdims=True) * inv_n


def bce_with_logits_loss_2d(scores, targets, *, weight=None, size_average=True,
                            block_rows=1024):
    """Forward of BCEWithLogitsLoss2d: mean BCE-with-logits over all elements.

    scores, targets: arrays of identical shape (any rank); returns a scalar.
    """
    assert scores.shape == targets.shape
    # TODO(synk): optional per-element `weight` rescaling (constructor default is
    # None); only weight=None is implemented.
    assert weight is None

    n = int(scores.size)
    x = scores.reshape(-1).astype(jnp.float32)
    t = targets.reshape(-1).astype(jnp.float32)

    # Lane-dense 2-D layout, row axis tiled by the grid.
    rows = pl.cdiv(n, _LANES)
    tr = min(block_rows, rows)
    tr = max(8, ((tr + 7) // 8) * 8)          # multiple of 8 sublanes
    rows_padded = pl.cdiv(rows, tr) * tr
    n_padded = rows_padded * _LANES
    if n_padded != n:
        x = jnp.pad(x, (0, n_padded - n))
        t = jnp.pad(t, (0, n_padded - n))
    x2 = x.reshape(rows_padded, _LANES)
    t2 = t.reshape(rows_padded, _LANES)

    inv_n = (1.0 / n) if size_average else 1.0

    out = pl.pallas_call(
        functools.partial(_bce_logits_mean_kernel, n_valid=n, inv_n=inv_n),
        out_shape=jax.ShapeDtypeStruct((1, 1), jnp.float32),
        grid=(rows_padded // tr,),
        in_specs=[
            pl.BlockSpec((tr, _LANES), lambda i: (i, 0)),
            pl.BlockSpec((tr, _LANES), lambda i: (i, 0)),
        ],
        out_specs=pl.BlockSpec((1, 1), lambda i: (0, 0)),
        scratch_shapes=[pltpu.VMEM((1, _LANES), jnp.float32)],
        compiler_params=pltpu.CompilerParams(
            dimension_semantics=("arbitrary",)),  # cross-tile running sum
    )(x2, t2)
    return out[0, 0]


def _reference(scores, targets):
    x = scores.reshape(-1).astype(jnp.float32)
    t = targets.reshape(-1).astype(jnp.float32)
    loss = jnp.maximum(x, 0.0) - x * t + jnp.log1p(jnp.exp(-jnp.abs(x)))
    return jnp.mean(loss)


if __name__ == "__main__":
    key = jax.random.PRNGKey(0)
    ks, kt = jax.random.split(key)
    scores = jax.random.normal(ks, (2, 4, 16, 16), jnp.float32)              # logits
    targets = jax.random.bernoulli(kt, 0.5, (2, 4, 16, 16)).astype(jnp.float32)

    # Small tile so the multi-tile running-sum path (grid > 1) is exercised.
    out = jax.block_until_ready(
        bce_with_logits_loss_2d(scores, targets, block_rows=8))
    ref = jax.block_until_ready(_reference(scores, targets))
    np.testing.assert_allclose(np.asarray(out), np.asarray(ref),
                               atol=1e-5, rtol=1e-5)

    # Ragged element count (not a multiple of 128) exercises the padding mask.
    ks2, kt2 = jax.random.split(jax.random.PRNGKey(1))
    s2 = jax.random.normal(ks2, (3, 1, 10, 7), jnp.float32)
    t2 = jax.random.uniform(kt2, (3, 1, 10, 7), dtype=jnp.float32)
    out2 = jax.block_until_ready(bce_with_logits_loss_2d(s2, t2))
    ref2 = jax.block_until_ready(_reference(s2, t2))
    np.testing.assert_allclose(np.asarray(out2), np.asarray(ref2),
                               atol=1e-5, rtol=1e-5)

    print("KERNEL_OK")
</pallas_src>

<mosaic_0001>
module attributes {stable_mosaic.version = 11 : i64} {
  func.func @_bce_logits_mean_kernel(%arg0: i32, %arg1: memref<8x128xf32, #tpu.memory_space<vmem>>, %arg2: memref<8x128xf32, #tpu.memory_space<vmem>>, %arg3: memref<1x1xf32, #tpu.memory_space<vmem>>, %arg4: memref<1x128xf32, #tpu.memory_space<vmem>>) attributes {dimension_semantics = [#tpu.dimension_semantics<arbitrary>], iteration_bounds = array<i64: 2>, scalar_prefetch = 0 : i64, scratch_operands = 1 : i64, tpu.core_type = #tpu.core_type<tc>, window_params = [{transform_indices = @transform_0, window_bounds = array<i64: 8, 128>}, {transform_indices = @transform_1, window_bounds = array<i64: 8, 128>}, {pipeline_mode = #tpu.pipeline_mode<synchronous>, transform_indices = @transform_2, window_bounds = array<i64: 1, 1>}]} {
    %c0_i32 = arith.constant 0 : i32
    %0 = arith.cmpi eq, %arg0, %c0_i32 : i32
    %1 = arith.extui %0 : i1 to i32
    %c0_i32_0 = arith.constant 0 : i32
    %2 = arith.cmpi ne, %1, %c0_i32_0 : i32
    scf.if %2 {
      %cst_12 = arith.constant 0.000000e+00 : f32
      %35 = vector.broadcast %cst_12 : f32 to vector<1x128xf32>
      %c0_13 = arith.constant 0 : index
      %c0_14 = arith.constant 0 : index
      %36 = vector.load %arg4[%c0_13, %c0_14] : memref<1x128xf32, #tpu.memory_space<vmem>>, vector<1x128xf32>
      tpu.vector_store %arg4[%c0_13, %c0_14], %35 {strides = array<i32>} : memref<1x128xf32, #tpu.memory_space<vmem>>, vector<1x128xf32>,
    } else {
    }
    %c0 = arith.constant 0 : index
    %c0_1 = arith.constant 0 : index
    %3 = vector.load %arg1[%c0, %c0_1] : memref<8x128xf32, #tpu.memory_space<vmem>>, vector<8x128xf32>
    %c0_2 = arith.constant 0 : index
    %c0_3 = arith.constant 0 : index
    %4 = vector.load %arg2[%c0_2, %c0_3] : memref<8x128xf32, #tpu.memory_space<vmem>>, vector<8x128xf32>
    %5 = tpu.iota {dimensions = array<i32: 0>} : vector<8x128xi32>
    %6 = tpu.iota {dimensions = array<i32: 1>} : vector<8x128xi32>
    %c8_i32 = arith.constant 8 : i32
    %7 = arith.muli %arg0, %c8_i32 : i32
    %8 = vector.broadcast %7 : i32 to vector<8x128xi32>
    %9 = arith.addi %8, %5 : vector<8x128xi32>
    %c128_i32 = arith.constant 128 : i32
    %10 = vector.broadcast %c128_i32 : i32 to vector<8x128xi32>
    %11 = arith.muli %9, %10 : vector<8x128xi32>
    %12 = arith.addi %11, %6 : vector<8x128xi32>
    %c2048_i32 = arith.constant 2048 : i32
    %13 = vector.broadcast %c2048_i32 : i32 to vector<8x128xi32>
    %14 = arith.cmpi slt, %12, %13 : vector<8x128xi32>
    %cst = arith.constant 0.000000e+00 : f32
    %15 = vector.broadcast %cst : f32 to vector<8x128xf32>
    %16 = arith.maximumf %3, %15 : vector<8x128xf32>
    %17 = arith.mulf %3, %4 : vector<8x128xf32>
    %18 = arith.subf %16, %17 : vector<8x128xf32>
    %19 = math.absf %3 : vector<8x128xf32>
    %cst_4 = arith.constant 0.000000e+00 : f32
    %20 = vector.broadcast %cst_4 : f32 to vector<8x128xf32>
    %21 = arith.subf %20, %19 : vector<8x128xf32>
    %22 = math.exp %21 : vector<8x128xf32>
    %23 = math.log1p %22 : vector<8x128xf32>
    %24 = arith.addf %18, %23 : vector<8x128xf32>
    %cst_5 = arith.constant 0.000000e+00 : f32
    %25 = vector.broadcast %cst_5 : f32 to vector<8x128xf32>
    %26 = arith.select %14, %24, %25 : vector<8x128xi1>, vector<8x128xf32>
    %c0_6 = arith.constant 0 : index
    %c0_7 = arith.constant 0 : index
    %27 = vector.load %arg4[%c0_6, %c0_7] : memref<1x128xf32, #tpu.memory_space<vmem>>, vector<1x128xf32>
    %cst_8 = arith.constant dense<0.000000e+00> : vector<128xf32>
    %28 = vector.multi_reduction <add>, %26, %cst_8 [0] : vector<8x128xf32> to vector<128xf32>
    %29 = vector.shape_cast %28 : vector<128xf32> to vector<1x128xf32>
    %30 = arith.addf %27, %29 : vector<1x128xf32>
    %c0_9 = arith.constant 0 : index
    %c0_10 = arith.constant 0 : index
    %31 = vector.load %arg4[%c0_9, %c0_10] : memref<1x128xf32, #tpu.memory_space<vmem>>, vector<1x128xf32>
    tpu.vector_store %arg4[%c0_9, %c0_10], %30 {strides = array<i32>} : memref<1x128xf32, #tpu.memory_space<vmem>>, vector<1x128xf32>,
    %c1_i32 = arith.constant 1 : i32
    %32 = arith.cmpi eq, %arg0, %c1_i32 : i32
    %33 = arith.extui %32 : i1 to i32
    %c0_i32_11 = arith.constant 0 : i32
    %34 = arith.cmpi ne, %33, %c0_i32_11 : i32
    scf.if %34 {
      %c0_12 = arith.constant 0 : index
      %c0_13 = arith.constant 0 : index
      %35 = vector.load %arg4[%c0_12, %c0_13] : memref<1x128xf32, #tpu.memory_space<vmem>>, vector<1x128xf32>
      %cst_14 = arith.constant dense<0.000000e+00> : vector<1xf32>
      %36 = vector.multi_reduction <add>, %35, %cst_14 [1] : vector<1x128xf32> to vector<1xf32>
      %37 = vector.shape_cast %36 : vector<1xf32> to vector<1x1xf32>
      %cst_15 = arith.constant 4.8828125E-4 : f32
      %38 = vector.broadcast %cst_15 : f32 to vector<1x1xf32>
      %39 = arith.mulf %37, %38 : vector<1x1xf32>
      %c0_16 = arith.constant 0 : index
      %c0_17 = arith.constant 0 : index
      %40 = vector.load %arg3[%c0_16, %c0_17] : memref<1x1xf32, #tpu.memory_space<vmem>>, vector<1x1xf32>
      tpu.vector_store %arg3[%c0_16, %c0_17], %39 {strides = array<i32>} : memref<1x1xf32, #tpu.memory_space<vmem>>, vector<1x1xf32>,
    } else {
    }
    return
  }
  func.func @transform_0(%arg0: i32) -> (i32, i32) {
    %c0_i32 = arith.constant 0 : i32
    %c0_i32_0 = arith.constant 0 : i32
    return %arg0, %c0_i32 : i32, i32
  }
  func.func @transform_1(%arg0: i32) -> (i32, i32) {
    %c0_i32 = arith.constant 0 : i32
    %c0_i32_0 = arith.constant 0 : i32
    return %arg0, %c0_i32 : i32, i32
  }
  func.func @transform_2(%arg0: i32) -> (i32, i32) {
    %c0_i32 = arith.constant 0 : i32
    %c0_i32_0 = arith.constant 0 : i32
    %c0_i32_1 = arith.constant 0 : i32
    return %c0_i32, %c0_i32_0 : i32, i32
  }
}

</mosaic_0001>

<bundles_post_ra>
// kernel: tpu_custom_call.1
= control target key start
LH: loop header
LB: loop body
LE: loop exit
PB: predicated region body
PF: predicated region fallthrough
CT: control target
= control target key end

     0   :  { %7 = vsyncpa [#allocation4], 0  ;;  %s717_s0 = inlined_call_operand.hbm [shape: f32[16,128], index: 0, kind: input, shape index: {}]   ;;  %s718_s1 = inlined_call_operand.hbm [shape: f32[16,128], index: 1, kind: input, shape index: {}]   ;;  %s719_s2 = inlined_call_operand.hbm [shape: f32[1,1], index: 2, kind: output, shape index: {}]  }
   0x1   :  { %9 = vsyncpa [#allocation4 + $0x1], 0 }
   0x2   :  { %10 = vsyncpa [#allocation7], 0 }
   0x3   :  { %12 = vsyncpa [#allocation7 + $0x1], 0 }
   0x4   :  { %13 = vsyncpa [#allocation5], 0  ;;  %s542_s9 = smov 0   ;;  %s544_s10 = smov 0  }
   0x5   :  { %s546_s11 = smov 0   ;;  %s548_s12 = smov 0  }
   0x6 LB: > { %s561_s13 = sadd.s32 4294967295, %s521_s12   ;;  %s564_s14 = sadd.s32 1, %s521_s12   ;;  %s521_s12 = sphi %s548_s12, %s731_s12   ;;  %s517_s11 = sphi %s546_s11, %s730_s11   ;;  %s513_s10 = sphi %s544_s10, %s729_s10   ;;  %s509_s9 = sphi %s542_s9, %s728_s9  }
   0x7   : > { %s23_s15 = ssub.s32 %s521_s12, %s564_s14  ;;  %s26_s16 = sadd.s32 1, %s517_s11 }
   0x8   : > { %p24_p0 = scmp.eq.s32.totalorder %s23_s15, 0  ;;  %p33_p1 = scmp.ne.s32.totalorder %s517_s11, %s513_s10 }
   0x9   : > { %p34_p2 = scmp.eq.s32.totalorder %s521_s12, 0  ;;  %p39_p3 = scmp.ne.s32.totalorder %s513_s10, %s509_s9 }
   0xa   : > { %s574_s17 = scalar_select %p24_p0, %s517_s11, %s26_s16  }
   0xb   : > { %p35_p4 = por %p34_p2, %p33_p1  ;;  %p40_p5 = scmp.eq.s32.totalorder %s561_s13, 0 }
   0xc   : > { %p352_p6 = scmp.lt.s32.totalorder %s521_s12, 2  ;;  %s583_s19 = sand.u32 1, %s517_s11  }
   0xd   : > { %p578_p7 = por %p40_p5, %p39_p3  ;;  %s323_s20 = sshll.u32 %s583_s19, 3 }
   0xe   : > { %s324_s21 = sshll.u32 %s521_s12, 7  ;;  %s114_s25 = scalar_lea.vmem [#allocation3], %s323_s20 }
   0xf   : > { %s721_s18 = scalar_select %p578_p7, 1, 0 }
  0x10   : > { %s592_s24 = scalar_lea.hbm %s717_s0, %s324_s21  ;;  %s121_s26 = sshll.u32 %s114_s25, 4  ;;  %s596_s26 = int_to_ptr.vmem [resolvable:$true] %s121_s26 }
  0x11   : > { %p598_p8 = pnand %p352_p6, %p35_p4  ;;  %s111_s28 = scalar_lea.sflag [#allocation4], %s583_s19 }
  0x12   : > { %s393_s29 = scalar_lea.hbm %s592_s24, 128  ;;  %s398_s4 = scalar_lea.hbm %s717_s0, 256 }
  0x13   : > { %p394_p11 = scmp.ne.s32.totalorder %s592_s24, %s393_s29  ;;  %p395_p12 = pneg %p598_p8 }
  0x14   : > { %p399_p1 = scmp.lt.u32.totalorder %s592_s24, %s717_s0  ;;  %p400_p2 = scmp.lt.u32.totalorder %s398_s4, %s393_s29 }
  0x15   : > { %p396_p13 = pnand %p395_p12, %p394_p11  ;;  %p402_p4 = scmp.lt.u32.totalorder %s393_s29, %s592_s24 }
  0x16   : > { %p401_p3 = por %p400_p2, %p399_p1 }
  0x17   : > { %p397_p0 = pneg %p396_p13 }
  0x18   : > { %p403_p5 = por %p402_p4, %p401_p3 }
  0x1a   : > { %p404_p6 = pnand %p403_p5, %p397_p0 }
  0x1c   : > { %407 = shalt.err (!%p404_p6)
}
  0x1d   : > { %s408_s7 = scalar_lea.vmem %s596_s26, 128  ;;  %s523_s8 = smov [#allocation3]  }
  0x1e   : > { %p409_p11 = scmp.ne.s32.totalorder %s596_s26, %s408_s7  ;;  %s413_s9 = sshll.u32 %s523_s8, 4  ;;  %s414_s9 = int_to_ptr.vmem [resolvable:$false] %s413_s9 }
  0x1f   : > { %s415_s15 = scalar_lea.vmem %s414_s9, 256  ;;  %p416_p10 = scmp.lt.s32.totalorder %s596_s26, %s414_s9 }
  0x20   : > { %p411_p13 = pnand %p409_p11, %p395_p12  ;;  %p417_p1 = scmp.lt.s32.totalorder %s415_s15, %s408_s7 }
  0x22   : > { %p412_p9 = pneg %p411_p13  ;;  %p418_p2 = por %p417_p1, %p416_p10 }
  0x24   : > { %p419_p3 = pnand %p418_p2, %p412_p9 }
  0x26   : > { %422 = shalt.err (!%p419_p3)
}
  0x27   : > { %348 = dma.hbm_to_vmem [thread:$0]  (!%p598_p8), %s592_s24, 128, %s596_s26, %s111_s28  }
  0x28   : > { %p723_p0 = scmp.lt.s32.totalorder %s521_s12, 3  ;;  %p724_p4 = scmp.ge.s32.totalorder %s521_s12, 1 }
  0x29   : > { %s643_s25 = scalar_lea.hbm %s718_s1, %s324_s21  ;;  %s132_s29 = scalar_lea.vmem [#allocation6], %s323_s20 }
  0x2a   : > { %p634_p5 = pnand %p724_p4, %p723_p0  ;;  %s139_s30 = sshll.u32 %s132_s29, 4  ;;  %s140_s30 = int_to_ptr.vmem [resolvable:$true] %s139_s30 }
  0x2b   : > { %s129_s24 = scalar_lea.sflag [#allocation7], %s583_s19  ;;  %s423_s26 = scalar_lea.hbm %s643_s25, 128 }
  0x2c   : > { %s725_s16 = scalar_select %p634_p5, 1, 0 }
  0x2d   : > { %p424_p9 = scmp.ne.s32.totalorder %s643_s25, %s423_s26  ;;  %s428_s21 = scalar_lea.hbm %s718_s1, 256 }
  0x2e   : > { %p429_p11 = scmp.lt.u32.totalorder %s643_s25, %s718_s1  ;;  %p430_p13 = scmp.lt.u32.totalorder %s428_s21, %s423_s26 }
  0x2f   : > { %p426_p10 = pnand %p424_p9, %p395_p12  ;;  %p432_p2 = scmp.lt.u32.totalorder %s423_s26, %s643_s25 }
  0x30   : > { %p431_p1 = por %p430_p13, %p429_p11 }
  0x31   : > { %p427_p6 = pneg %p426_p10 }
  0x32   : > { %p433_p3 = por %p432_p2, %p431_p1 }
  0x34   : > { %p434_p0 = pnand %p433_p3, %p427_p6 }
  0x36   : > { %437 = shalt.err (!%p434_p0)
}
  0x37   : > { %s438_s19 = scalar_lea.vmem %s140_s30, 128  ;;  %s524_s20 = smov [#allocation6]  }
  0x38   : > { %p439_p4 = scmp.ne.s32.totalorder %s140_s30, %s438_s19  ;;  %s443_s5 = sshll.u32 %s524_s20, 4  ;;  %s444_s5 = int_to_ptr.vmem [resolvable:$false] %s443_s5 }
  0x39   : > { %s445_s6 = scalar_lea.vmem %s444_s5, 256  ;;  %p446_p7 = scmp.lt.s32.totalorder %s140_s30, %s444_s5 }
  0x3a   : > { %p441_p9 = pnand %p439_p4, %p395_p12  ;;  %p447_p5 = scmp.lt.s32.totalorder %s445_s6, %s438_s19 }
  0x3c   : > { %p442_p10 = pneg %p441_p9  ;;  %p448_p11 = por %p447_p5, %p446_p7 }
  0x3e   : > { %p449_p13 = pnand %p448_p11, %p442_p10 }
  0x40   : > { %452 = shalt.err (!%p449_p13)
}
  0x41   : > { %351 = dma.hbm_to_vmem [thread:$0]  (!%p598_p8), %s643_s25, 128, %s140_s30, %s129_s24  }
  0x42   : > { %p726_p6 = scmp.ne.s32.totalorder %s725_s16, 0 }
  0x43   : > { %s150_s7 = sand.u32 (!%p726_p6), 1, %s513_s10   ;;  %p727_p12 = scmp.ne.s32.totalorder (!%p726_p6), %s721_s18, 0 }
  0x44   : > { %148 = sbr.rel (%p726_p6) target bundleno = 317 (0x13d), region = 28  ;;  %s328_s8 = sshll.u32 (!%p726_p6), %s150_s7, 3 }
  0x45   : > { %s151_s9 = scalar_lea.sflag (!%p726_p6), [#allocation4], %s150_s7  ;;  %s154_s15 = scalar_lea.vmem (!%p726_p6), [#allocation3], %s328_s8 }
  0x4b   : > { %496 = dma.done.wait (%p727_p12), %s151_s9, 128  }
  0x4c   : > { %498 = vsyncadd (%p727_p12), %s151_s9, 4294967168  ;;  %s160_s22 = scalar_lea.sflag [#allocation7], %s150_s7  ;;  %s163_s23 = scalar_lea.vmem [#allocation6], %s328_s8 }
  0x4d   : > { %500 = dma.done.wait (%p727_p12), %s160_s22, 128  }
  0x4e   : > { %502 = vsyncadd (%p727_p12), %s160_s22, 4294967168  ;;  %p330_p7 = scmp.ne.s32.totalorder %s561_s13, 0 }
  0x4f   : > { %v525_v0 = vmov (!%p330_p7), 0.0  }
  0x50   : > { %187 = sbr.rel (%p330_p7) target bundleno = 87 (0x57), region = 40  ;;  %188 = vst [vmem:[#allocation2] sm:$0x1] (!%p330_p7), %v525_v0 }
  0x57 PF: > { %v189_v1 = vld [vmem:[%s154_s15] sm:$0xff]  ;;  %v191_v5 = vlaneseq  ;;  %s331_s27 = sshll.u32 %s561_s13, 3  ;;  %v190_v12 = vld [vmem:[%s163_s23] sm:$0xff]  ;;  %p332_p8 = scmp.ne.s32.totalorder %s561_s13, 1 }
  0x58   : > { %v204_v2 = vand.u32 2147483647, %v189_v1  ;;  %v196_v8 = vstv %s331_s27  ;;  %v201_v16 = vmax.f32 %v189_v1, 0.0  ;;  %v202_v17 = vmul.f32 %v190_v12, %v189_v1  ;;  %v219_v32 = vld [vmem:[#allocation2] sm:$0x1] }
  0x59   : > { %v192_v7 = vshrl.u32 %v191_v5, 7  ;;  %v194_v13 = vand.u32 127, %v191_v5  ;;  %vm233_vm2 = vcmask (!%p332_p8), 1040384   ;;  %vm238_vm3 = vcmask (!%p332_p8), 0  }
  0x5a   : > { %v205_v3 = vsub.f32 0.0, %v204_v2  ;;  %v203_v22 = vsub.f32 %v201_v16, %v202_v17 }
  0x5b   : > { %v197_v10 = vadd.s32 %v196_v8, %v192_v7 }
  0x5c   : > { %v206_v4 = vmul.f32 1.442695, %v205_v3 }
  0x5d   : > { %v198_v14 = vmul.u32 128, %v197_v10 }
  0x5e   : > { %389 = vpow2.f32 %v206_v4 }
  0x5f   : > { %v199_v19 = vadd.s32 %v198_v14, %v194_v13 }
  0x61   : > { %vm200_vm1 = vcmp.lt.s32.totalorder %v199_v19, 2048 }
  0x68   : > { %v390_v6 = vpop.eup %389 }
  0x69   : > { %v208_v9 = vadd.f32 1.0, %v390_v6  ;;  %v211_v11 = vmul.f32 -0.5, %v390_v6  ;;  %v214_v18 = vand.u32 2147483647, %v390_v6 }
  0x6b   : > { %391 = vlog2.f32 %v208_v9  ;;  %v212_v15 = vadd.f32 1.0, %v211_v11  ;;  %vm215_vm0 = vcmp.lt.f32.partialorder %v214_v18, 0.0004427343 }
  0x6d   : > { %v213_v20 = vmul.f32 %v390_v6, %v212_v15 }
  0x75   : > { %v392_v21 = vpop.eup %391 }
  0x76   : > { %v210_v23 = vmul.f32 0.6931472, %v392_v21 }
  0x78   : > { %v216_v24 = vsel %vm215_vm0, %v213_v20, %v210_v23 }
  0x79   : > { %v217_v25 = vadd.f32 %v216_v24, %v203_v22 }
  0x7b   : > { %v218_v26 = vsel %vm200_vm1, %v217_v25, 0.0 }
  0x7c   : > { %v220_v27 = vrot.slane %v218_v26, 4 }
  0x7e   : > { %v221_v28 = vadd.f32 %v220_v27, %v218_v26 }
  0x80   : > { %v222_v29 = vrot.slane %v221_v28, 2 }
  0x82   : > { %v223_v30 = vadd.f32 %v222_v29, %v221_v28 }
  0x84   : > { %v224_v31 = vrot.slane %v223_v30, 1  ;;  %231 = sbr.rel (%p332_p8) target bundleno = 292 (0x124), region = 44 }
  0x86   : > { %v225_v33 = vadd.f32 %v224_v31, %v223_v30 }
  0x88   : > { %v226_v34 = vadd.f32 %v225_v33, %v219_v32 }
  0x8a   : > { %227 = vst [vmem:[#allocation2] sm:$0x1] %v226_v34 }
  0x91   : > { %v232_v35 = vld [vmem:[#allocation2] sm:$0x1] }
  0x92   : > { %v234_v36 = vsel %vm233_vm2, %v232_v35, 0.0 }
  0x93   : > { %235 = vadd.xlane.f32.xlu0 %v234_v36 }
 0x120   : > { %v236_v37 = vpop.xlane.xlu0 %235 }
 0x121   : > { %v237_v38 = vmul.f32 0.00048828125, %v236_v37 }
 0x123   : > { %239 = vst.msk [vmem:[#allocation8] sm:$0x1] %vm238_vm3, %v237_v38 }
 0x124 PF: > { %p353_p5 = scmp.eq.s32.totalorder %s561_s13, 1  ;;  %s526_s18 = smov [#allocation8]  }
 0x125   : > { %s247_s16 = sshll.u32 %s526_s18, 4  ;;  %s248_s16 = int_to_ptr.vmem [resolvable:$true] %s247_s16 }
 0x126   : > { %s453_s25 = scalar_lea.vmem %s248_s16, 16  ;;  %s459_s29 = scalar_lea.vmem %s248_s16, 32 }
 0x127   : > { %p454_p1 = scmp.ne.s32.totalorder %s248_s16, %s453_s25  ;;  %p460_p0 = scmp.lt.s32.totalorder %s248_s16, %s248_s16 }
 0x128   : > { %p461_p4 = scmp.lt.s32.totalorder %s459_s29, %s453_s25 }
 0x129   : > { %p455_p2 = pnand %p454_p1, %p353_p5 }
 0x12a   : > { %p462_p9 = por %p461_p4, %p460_p0 }
 0x12b   : > { %p456_p3 = pneg %p455_p2 }
 0x12d   : > { %p463_p10 = pnand %p462_p9, %p456_p3 }
 0x12f   : > { %466 = shalt.err (!%p463_p10)
}
 0x130   : > { %s467_s26 = scalar_lea.hbm %s719_s2, 16 }
 0x131   : > { %p468_p11 = scmp.ne.s32.totalorder %s719_s2, %s467_s26  ;;  %p473_p12 = scmp.lt.u32.totalorder %s467_s26, %s719_s2 }
 0x133   : > { %p469_p13 = pnand %p468_p11, %p353_p5 }
 0x135   : > { %p470_p6 = pneg %p469_p13 }
 0x137   : > { %p475_p7 = pnand %p473_p12, %p470_p6 }
 0x139   : > { %478 = shalt.err (!%p475_p7)
}
 0x13a   : > { %342 = dma.vmem_to_hbm [thread:$0]  (%p353_p5), %s248_s16, 16, %s719_s2, [#allocation5]  }
 0x13b   : > { %504 = dma.done.wait (%p353_p5), [#allocation5], 16  }
 0x13c   : > { %506 = vsyncadd (%p353_p5), [#allocation5], 4294967280 }
 0x13d PF: > { %p16_p8 = scmp.ge.s32.totalorder %s564_s14, 4   ;;  %s728_s9 = smov %s513_s10 }
 0x13e   : > { %s729_s10 = smov %s517_s11  ;;  %s730_s11 = smov %s574_s17 }
 0x13f   : > { %s731_s12 = smov %s564_s14  ;;  %18 = sbr.rel (!%p16_p8) target bundleno = 6 (0x6), region = 86 }
 0x146   :  { %260 = vsyncpa [#allocation4], 1 }
 0x147   :  { %262 = vsyncpa [#allocation4 + $0x1], 1 }
 0x148   :  { %263 = vsyncpa [#allocation7], 1 }
 0x149   :  { %265 = vsyncpa [#allocation7 + $0x1], 1 }
 0x14a   :  { %266 = vsyncpa [#allocation5], 1 }
 0x14b   :  { %268 = vsyncpa [#allocation5 + $0x1], 1 }

</bundles_post_ra>
